<compile_context>
chip_gen: v7x
topology: tpu7x:2x2x1
jax: 0.10.0
libtpu: 0.0.40
codegen_flags: <defaults>
</compile_context>

<pallas_src>
import functools

import jax
import jax.numpy as jnp
from jax import lax
from jax.experimental import pallas as pl
from jax.experimental.pallas import tpu as pltpu

LANES = 128
SUBLANES = 8
CHUNK_ROWS = 256          # strip-mine size: (256, 128) f32 = 128 KiB per temp


def _round_up(a, b):
    return -(-a // b) * b


def _chip_config():
    """Return (max f32-equivalent tile rows, num slices, vmem limit bytes)."""
    kind = ""
    try:
        kind = jax.devices()[0].device_kind.lower()
    except Exception:
        pass
    if "v7" in kind:
        # 2 TensorCores, 64 MiB VMEM/TC, 3.2 TB/s HBM: 4 MiB blocks, 2 slices.
        return 8192, 2, 48 * 1024 * 1024
    if "v6" in kind:
        # 1 TC, 128 MiB VMEM, ~1.4 TB/s HBM: 4 MiB blocks, single slice.
        return 8192, 1, 64 * 1024 * 1024
    # v5e (or unknown): 2 MiB blocks + explicit 32 MiB scoped VMEM. Safe anywhere.
    return 4096, 1, 32 * 1024 * 1024


def _bce_elementwise(x, t):
    """Per-element BCE with PyTorch's -100 log clamp (f32 in / f32 out)."""
    log_x = jnp.maximum(jnp.log(x), -100.0)
    log_1mx = jnp.maximum(jnp.log1p(-x), -100.0)
    return -(t * log_x + (1.0 - t) * log_1mx)


def _bce_partial_sum_kernel(x_ref, t_ref, out_ref, *, tile_rows, chunk_rows,
                            steps_per_slice, valid_rows, has_tail):
    c = pl.program_id(0)            # slice (megacore-parallel on v7x)
    k = pl.program_id(1)            # reduction step within the slice

    @pl.when(k == 0)
    def _():
        out_ref[...] = jnp.zeros_like(out_ref)

    tile_base = (c * steps_per_slice + k) * tile_rows

    def chunk_sum(row0, nrows, masked):
        x = x_ref[pl.ds(row0, nrows), :].astype(jnp.float32)
        t = t_ref[pl.ds(row0, nrows), :].astype(jnp.float32)
        if masked:
            # Mask the inputs (not the loss) so garbage rows of a partial edge
            # block never reach log(); x=t=1 gives exactly-zero loss terms.
            row = tile_base + row0 + lax.broadcasted_iota(jnp.int32, x.shape, 0)
            valid = row < valid_rows
            x = jnp.where(valid, x, 1.0)
            t = jnp.where(valid, t, 1.0)
        loss = _bce_elementwise(x, t)
        # Fold (nrows, 128) onto the native (8, 128) vreg tile with VPU adds.
        return loss.reshape(nrows // SUBLANES, SUBLANES, LANES).sum(axis=0)

    nfull = tile_rows // chunk_rows
    rem = tile_rows - nfull * chunk_rows        # multiple of 8

    def accumulate(masked, unroll):
        acc = jnp.zeros((SUBLANES, LANES), jnp.float32)
        if nfull:
            def body(i, a):
                row0 = pl.multiple_of(i * chunk_rows, chunk_rows)
                return a + chunk_sum(row0, chunk_rows, masked)
            acc = lax.fori_loop(0, nfull, body, acc, unroll=min(unroll, nfull))
        if rem:
            acc = acc + chunk_sum(nfull * chunk_rows, rem, masked)
        return acc

    if has_tail:
        # Only the single grid step owning the ragged edge pays for the mask.
        tile_end = tile_base + tile_rows

        @pl.when(tile_end <= valid_rows)
        def _():
            out_ref[0] += accumulate(False, 8)

        @pl.when(tile_end > valid_rows)
        def _():
            out_ref[0] += accumulate(True, 1)
    else:
        out_ref[0] += accumulate(False, 8)


def bce_loss(inputs, targets):
    """Mean BCE over all elements (== nn.BCELoss / F.binary_cross_entropy)."""
    x = inputs.reshape(-1)
    t = targets.reshape(-1)
    n = x.shape[0]

    base_rows, num_slices, vmem_limit = _chip_config()
    itemsize = max(x.dtype.itemsize, t.dtype.itemsize)
    row_align = SUBLANES * max(1, 4 // itemsize)        # 8 f32 / 16 bf16
    max_tile_rows = base_rows * max(1, 4 // itemsize)   # ~constant block bytes

    align_elems = row_align * LANES
    main_elems = (n // align_elems) * align_elems
    tail_elems = n - main_elems

    # Ragged tail handled in plain JAX: no full-array jnp.pad copy, and for an
    # aligned n (the common NCHW case) no wrapper-side copy at all.
    if tail_elems:
        tail = jnp.sum(_bce_elementwise(x[main_elems:].astype(jnp.float32),
                                        t[main_elems:].astype(jnp.float32)))
    else:
        tail = jnp.float32(0.0)

    if main_elems == 0:
        return tail / jnp.float32(n)

    rows = main_elems // LANES                          # multiple of row_align
    if tail_elems:
        x2 = x[:main_elems].reshape(rows, LANES)
        t2 = t[:main_elems].reshape(rows, LANES)
    else:
        x2 = x.reshape(rows, LANES)
        t2 = t.reshape(rows, LANES)

    tile_rows = min(max_tile_rows, rows)
    nblocks = pl.cdiv(rows, tile_rows)

    # Megacore split (v7x only): use 2 slices only when the blocks divide
    # exactly, so the index map never clamps / re-reads a duplicated block.
    # TODO(synk): verify in xprof that the "parallel" leading axis actually
    # shards across v7x's 2 TensorCores; otherwise switch to pl.core_map.
    if num_slices == 2 and nblocks > 1:
        nb = nblocks + (nblocks % 2)
        tr = min(_round_up(pl.cdiv(rows, nb), row_align), max_tile_rows)
        if pl.cdiv(rows, tr) == nb:
            tile_rows, nblocks = tr, nb
        else:
            num_slices = 1
    else:
        num_slices = 1
    sps = nblocks // num_slices
    has_tail = (rows % tile_rows) != 0
    chunk_rows = min(CHUNK_ROWS, tile_rows)

    kernel = functools.partial(
        _bce_partial_sum_kernel,
        tile_rows=tile_rows,
        chunk_rows=chunk_rows,
        steps_per_slice=sps,
        valid_rows=rows,
        has_tail=has_tail,
    )

    in_spec = pl.BlockSpec((tile_rows, LANES), lambda c, k: (c * sps + k, 0))

    partial_sums = pl.pallas_call(
        kernel,
        out_shape=jax.ShapeDtypeStruct((num_slices, SUBLANES, LANES), jnp.float32),
        grid_spec=pltpu.PrefetchScalarGridSpec(
            num_scalar_prefetch=0,
            grid=(num_slices, sps),
            in_specs=[in_spec, in_spec],
            out_specs=pl.BlockSpec((1, SUBLANES, LANES), lambda c, k: (c, 0, 0)),
        ),
        compiler_params=pltpu.CompilerParams(
            dimension_semantics=("parallel", "arbitrary"),
            vmem_limit_bytes=vmem_limit,
        ),
    )(x2, t2)

    return (jnp.sum(partial_sums) + tail) / jnp.float32(n)


if __name__ == "__main__":
    key = jax.random.PRNGKey(0)
    k1, k2 = jax.random.split(key)

    # Small NCHW shapes consistent with a segmentation output.
    B, C, H, W = 2, 4, 16, 16
    # Predictions must be probabilities in (0, 1); targets are {0, 1} masks.
    inputs = jax.nn.sigmoid(jax.random.normal(k1, (B, C, H, W), jnp.float32))
    targets = (jax.random.uniform(k2, (B, C, H, W)) > 0.5).astype(jnp.float32)

    loss = jax.jit(bce_loss)(inputs, targets)
    jax.block_until_ready(loss)

    # Pure-JAX reference (same clamping semantics as PyTorch's BCE).
    xr = inputs.reshape(-1)
    tr = targets.reshape(-1)
    ref = jnp.mean(
        -(tr * jnp.maximum(jnp.log(xr), -100.0)
          + (1.0 - tr) * jnp.maximum(jnp.log1p(-xr), -100.0))
    )
    assert jnp.allclose(loss, ref, atol=1e-5, rtol=1e-5), (loss, ref)

    print("KERNEL_OK")
</pallas_src>

<mosaic_0001>
module attributes {stable_mosaic.version = 11 : i64} {
  func.func @_bce_partial_sum_kernel(%arg0: i32, %arg1: i32, %arg2: memref<16x128xf32, #tpu.memory_space<vmem>>, %arg3: memref<16x128xf32, #tpu.memory_space<vmem>>, %arg4: memref<1x8x128xf32, #tpu.memory_space<vmem>>) attributes {dimension_semantics = [#tpu.dimension_semantics<parallel>, #tpu.dimension_semantics<arbitrary>], iteration_bounds = array<i64: 1, 1>, scalar_prefetch = 0 : i64, scratch_operands = 0 : i64, tpu.core_type = #tpu.core_type<tc>, window_params = [{transform_indices = @transform_0, window_bounds = array<i64: 16, 128>}, {transform_indices = @transform_1, window_bounds = array<i64: 16, 128>}, {transform_indices = @transform_2, window_bounds = array<i64: 1, 8, 128>}]} {
    %c0_i32 = arith.constant 0 : i32
    %0 = arith.cmpi eq, %arg1, %c0_i32 : i32
    %1 = arith.extui %0 : i1 to i32
    %c0_i32_0 = arith.constant 0 : i32
    %2 = arith.cmpi ne, %1, %c0_i32_0 : i32
    scf.if %2 {
      %cst_15 = arith.constant 0.000000e+00 : f32
      %34 = vector.broadcast %cst_15 : f32 to vector<1x8x128xf32>
      %c0_16 = arith.constant 0 : index
      %c0_17 = arith.constant 0 : index
      %c0_18 = arith.constant 0 : index
      %35 = vector.load %arg4[%c0_16, %c0_17, %c0_18] : memref<1x8x128xf32, #tpu.memory_space<vmem>>, vector<1x8x128xf32>
      tpu.vector_store %arg4[%c0_16, %c0_17, %c0_18], %34 {strides = array<i32>} : memref<1x8x128xf32, #tpu.memory_space<vmem>>, vector<1x8x128xf32>,
    } else {
    }
    %c0 = arith.constant 0 : index
    %c0_1 = arith.constant 0 : index
    %c0_2 = arith.constant 0 : index
    %3 = vector.load %arg4[%c0, %c0_1, %c0_2] : memref<1x8x128xf32, #tpu.memory_space<vmem>>, vector<1x8x128xf32>
    %4 = vector.shape_cast %3 : vector<1x8x128xf32> to vector<8x128xf32>
    %cst = arith.constant 0.000000e+00 : f32
    %5 = vector.broadcast %cst : f32 to vector<8x128xf32>
    %c0_i32_3 = arith.constant 0 : i32
    %c16_i32 = arith.constant 16 : i32
    %6 = arith.muli %c0_i32_3, %c16_i32 : i32
    %7 = tpu.assume_multiple %6, 16 : i32
    %8 = arith.index_cast %7 : i32 to index
    %c0_4 = arith.constant 0 : index
    %9 = vector.load %arg2[%8, %c0_4] : memref<16x128xf32, #tpu.memory_space<vmem>>, vector<16x128xf32>
    %10 = arith.index_cast %7 : i32 to index
    %c0_5 = arith.constant 0 : index
    %11 = vector.load %arg3[%10, %c0_5] : memref<16x128xf32, #tpu.memory_space<vmem>>, vector<16x128xf32>
    %12 = math.log %9 : vector<16x128xf32>
    %cst_6 = arith.constant -1.000000e+02 : f32
    %13 = vector.broadcast %cst_6 : f32 to vector<16x128xf32>
    %14 = arith.maximumf %12, %13 : vector<16x128xf32>
    %cst_7 = arith.constant 0.000000e+00 : f32
    %15 = vector.broadcast %cst_7 : f32 to vector<16x128xf32>
    %16 = arith.subf %15, %9 : vector<16x128xf32>
    %17 = math.log1p %16 : vector<16x128xf32>
    %cst_8 = arith.constant -1.000000e+02 : f32
    %18 = vector.broadcast %cst_8 : f32 to vector<16x128xf32>
    %19 = arith.maximumf %17, %18 : vector<16x128xf32>
    %20 = arith.mulf %11, %14 : vector<16x128xf32>
    %cst_9 = arith.constant 1.000000e+00 : f32
    %21 = vector.broadcast %cst_9 : f32 to vector<16x128xf32>
    %22 = arith.subf %21, %11 : vector<16x128xf32>
    %23 = arith.mulf %22, %19 : vector<16x128xf32>
    %24 = arith.addf %20, %23 : vector<16x128xf32>
    %cst_10 = arith.constant 0.000000e+00 : f32
    %25 = vector.broadcast %cst_10 : f32 to vector<16x128xf32>
    %26 = arith.subf %25, %24 : vector<16x128xf32>
    %27 = vector.shape_cast %26 : vector<16x128xf32> to vector<2x8x128xf32>
    %cst_11 = arith.constant dense<0.000000e+00> : vector<8x128xf32>
    %28 = vector.multi_reduction <add>, %27, %cst_11 [0] : vector<2x8x128xf32> to vector<8x128xf32>
    %29 = arith.addf %5, %28 : vector<8x128xf32>
    %c1_i32 = arith.constant 1 : i32
    %30 = arith.addf %4, %29 : vector<8x128xf32>
    %c0_12 = arith.constant 0 : index
    %c0_13 = arith.constant 0 : index
    %c0_14 = arith.constant 0 : index
    %31 = vector.load %arg4[%c0_12, %c0_13, %c0_14] : memref<1x8x128xf32, #tpu.memory_space<vmem>>, vector<1x8x128xf32>
    %32 = vector.shape_cast %31 : vector<1x8x128xf32> to vector<8x128xf32>
    %33 = vector.shape_cast %30 : vector<8x128xf32> to vector<1x8x128xf32>
    tpu.vector_store %arg4[%c0_12, %c0_13, %c0_14], %33 {strides = array<i32>} : memref<1x8x128xf32, #tpu.memory_space<vmem>>, vector<1x8x128xf32>,
    return
  }
  func.func @transform_0(%arg0: i32, %arg1: i32) -> (i32, i32) {
    %c1_i32 = arith.constant 1 : i32
    %0 = arith.muli %arg0, %c1_i32 : i32
    %1 = arith.addi %0, %arg1 : i32
    %c0_i32 = arith.constant 0 : i32
    %c0_i32_0 = arith.constant 0 : i32
    return %1, %c0_i32 : i32, i32
  }
  func.func @transform_1(%arg0: i32, %arg1: i32) -> (i32, i32) {
    %c1_i32 = arith.constant 1 : i32
    %0 = arith.muli %arg0, %c1_i32 : i32
    %1 = arith.addi %0, %arg1 : i32
    %c0_i32 = arith.constant 0 : i32
    %c0_i32_0 = arith.constant 0 : i32
    return %1, %c0_i32 : i32, i32
  }
  func.func @transform_2(%arg0: i32, %arg1: i32) -> (i32, i32, i32) {
    %c0_i32 = arith.constant 0 : i32
    %c0_i32_0 = arith.constant 0 : i32
    %c0_i32_1 = arith.constant 0 : i32
    return %arg0, %c0_i32, %c0_i32_0 : i32, i32, i32
  }
}

</mosaic_0001>

<bundles_post_ra>
// kernel: bce_loss.1
= control target key start
LH: loop header
LB: loop body
LE: loop exit
PB: predicated region body
PF: predicated region fallthrough
CT: control target
= control target key end

     0   :  { %s162_s0 = inlined_call_operand.vmem [shape: f32[16,128], index: 0, kind: input, shape index: {}]   ;;  %s163_s1 = inlined_call_operand.vmem [shape: f32[16,128], index: 1, kind: input, shape index: {}]   ;;  %s164_s2 = inlined_call_operand.vmem [shape: f32[1,8,128], index: 2, kind: output, shape index: {}]  }
   0x1   :  { %v61_v0 = vld [vmem:[%s162_s0] sm:$0xff]  ;;  %v62_v1 = vld [vmem:[%s162_s0 + $0x8] sm:$0xff] }
   0x2   :  { %124 = vlog2.f32 %v61_v0  ;;  %v71_v2 = vsub.f32 0.0, %v61_v0  ;;  %v72_v3 = vsub.f32 0.0, %v62_v1  ;;  %v63_v16 = vld [vmem:[%s163_s1] sm:$0xff]  ;;  %v64_v19 = vld [vmem:[%s163_s1 + $0x8] sm:$0xff] }
   0x3   :  { %126 = vlog2.f32 %v62_v1  ;;  %v95_v26 = vsub.f32 1.0, %v63_v16  ;;  %v96_v28 = vsub.f32 1.0, %v64_v19 }
   0x4   :  { %v73_v4 = vadd.f32 1.0, %v71_v2  ;;  %v82_v5 = vadd.f32 1.0, %v72_v3  ;;  %v76_v6 = vmul.f32 -0.5, %v71_v2  ;;  %v85_v7 = vmul.f32 -0.5, %v72_v3 }
   0x5   :  { %v79_v10 = vand.u32 2147483647, %v71_v2  ;;  %v88_v14 = vand.u32 2147483647, %v72_v3 }
   0x6   :  { %128 = vlog2.f32 %v73_v4  ;;  %v77_v8 = vadd.f32 1.0, %v76_v6  ;;  %v86_v11 = vadd.f32 1.0, %v85_v7 }
   0x7   :  { %130 = vlog2.f32 %v82_v5  ;;  %vm80_vm0 = vcmp.lt.f32.partialorder %v79_v10, 0.0004427343  ;;  %vm89_vm1 = vcmp.lt.f32.partialorder %v88_v14, 0.0004427343 }
   0x8   :  { %v78_v17 = vmul.f32 %v77_v8, %v71_v2  ;;  %v87_v21 = vmul.f32 %v86_v11, %v72_v3 }
   0xc   :  { %v125_v9 = vpop.eup %124 }
   0xd   :  { %v127_v12 = vpop.eup %126  ;;  %v66_v13 = vmul.f32 0.6931472, %v125_v9 }
   0xe   :  { %v68_v15 = vmul.f32 0.6931472, %v127_v12 }
   0xf   :  { %v69_v20 = vmax.f32 %v66_v13, -100.0 }
  0x10   :  { %v129_v18 = vpop.eup %128  ;;  %v70_v23 = vmax.f32 %v68_v15, -100.0 }
  0x11   :  { %v131_v22 = vpop.eup %130  ;;  %v75_v24 = vmul.f32 0.6931472, %v129_v18  ;;  %v93_v31 = vmul.f32 %v69_v20, %v63_v16 }
  0x12   :  { %v84_v25 = vmul.f32 0.6931472, %v131_v22  ;;  %v94_v33 = vmul.f32 %v70_v23, %v64_v19 }
  0x13   :  { %v81_v27 = vsel %vm80_vm0, %v78_v17, %v75_v24 }
  0x14   :  { %v90_v29 = vsel %vm89_vm1, %v87_v21, %v84_v25  ;;  %v91_v30 = vmax.f32 %v81_v27, -100.0 }
  0x15   :  { %v92_v32 = vmax.f32 %v90_v29, -100.0 }
  0x16   :  { %v97_v34 = vmul.f32 %v95_v26, %v91_v30 }
  0x17   :  { %v98_v35 = vmul.f32 %v96_v28, %v92_v32 }
  0x18   :  { %v99_v36 = vadd.f32 %v97_v34, %v93_v31 }
  0x19   :  { %v100_v37 = vadd.f32 %v98_v35, %v94_v33 }
  0x1a   :  { %v101_v38 = vsub.f32 0.0, %v99_v36 }
  0x1b   :  { %v102_v39 = vsub.f32 0.0, %v100_v37 }
  0x1d   :  { %v103_v40 = vadd.f32 %v102_v39, %v101_v38 }
  0x1f   :  { %106 = vst [vmem:[%s164_s2] sm:$0xff] %v103_v40 }

</bundles_post_ra>
